<compile_context>
chip_gen: v7x
topology: tpu7x:2x2x1
jax: 0.10.0
libtpu: 0.0.40
codegen_flags: <defaults>
</compile_context>

<pallas_src>
import functools

import jax
import jax.numpy as jnp
from jax import lax
from jax.experimental import pallas as pl
from jax.experimental.pallas import tpu as pltpu


# --------------------------------------------------------------------------- #
# Helpers
# --------------------------------------------------------------------------- #
def _sublane_multiple(dtype) -> int:
    """Minimum second-to-last-dim block multiple for a dtype (packed sublanes)."""
    itemsize = jnp.dtype(dtype).itemsize
    return max(8, 32 // max(1, itemsize))


def _vmem_budget():
    """(vmem_limit_bytes, max_block_bytes) derived from the actual chip."""
    try:
        cap = int(pltpu.get_tpu_info().vmem_capacity_bytes)
    except Exception:
        cap = 64 << 20  # conservative fallback (v7x per-core VMEM)
    vmem_limit = (cap * 3) // 4  # leave headroom for Mosaic internals
    # Per-step footprint ~ 2x in + 2x out double buffers (native dtype) plus
    # ~2 full-block f32 intermediates => keep the nominal block well below.
    max_block_bytes = max(256 * 1024, vmem_limit // 10)
    return vmem_limit, max_block_bytes


def _pick_block_rows(rows, hw, elem_bytes, max_block_bytes, sub):
    """Rows per block for the 'full plane per row' fast path.

    Returns 0 when even the minimum legal row block does not fit the VMEM
    budget, signalling the caller to take the lane-chunked path instead.
    Never returns a block larger than the budget.
    """
    if rows <= sub:
        # Full-extent row block is always tiling-legal; take it only if it fits.
        return rows if rows * hw * elem_bytes <= max_block_bytes else 0
    if sub * hw * elem_bytes > max_block_bytes:
        return 0
    rb = min(rows, max_block_bytes // (hw * elem_bytes))
    rb = max(sub, (rb // sub) * sub)
    # Megacore: ensure >= 2 grid steps so both TensorCores (v7x) get work.
    if rb >= rows:
        rb = max(sub, ((pl.cdiv(rows, 2) + sub - 1) // sub) * sub)
    return rb


# --------------------------------------------------------------------------- #
# Fast path: full H*W plane per row, Rb rows per grid step
# --------------------------------------------------------------------------- #
def _norm2d_rows_kernel(x_ref, gb_ref, o_ref):
    # x_ref: (Rb, HW) — Rb fused (n, c) rows, full plane per row.
    x = x_ref[...].astype(jnp.float32)
    hw = x.shape[-1]
    # torch.std is unbiased; hw == 1 would be NaN in torch — guarded here.
    denom = hw - 1 if hw > 1 else 1

    mean = jnp.sum(x, axis=-1, keepdims=True) * (1.0 / hw)
    diff = x - mean
    var = jnp.sum(diff * diff, axis=-1, keepdims=True) * (1.0 / denom)
    inv_std = 1.0 / (jnp.sqrt(var) + 1e-5)  # exact divide preserves accuracy

    gamma = gb_ref[:, 0:1].astype(jnp.float32)
    beta = gb_ref[:, 1:2].astype(jnp.float32)
    scale = gamma * inv_std  # per-row scalar math hoisted off the hot path

    # Re-read x instead of reusing `diff`: frees the (Rb, HW) f32 temp so the
    # live working set per block is smaller (most valuable on v7x's 64 MiB).
    o_ref[...] = ((x_ref[...].astype(jnp.float32) - mean) * scale + beta).astype(
        o_ref.dtype
    )


# --------------------------------------------------------------------------- #
# Large-plane fallback: chunk the H*W axis (two passes)
# --------------------------------------------------------------------------- #
def _stats_kernel(x_ref, gb_ref, st_ref, sum_ref, sq_ref, *, hw_total, hw_chunk):
    k = pl.program_id(1)
    nk = pl.num_programs(1)

    @pl.when(k == 0)
    def _():
        sum_ref[...] = jnp.zeros_like(sum_ref)
        sq_ref[...] = jnp.zeros_like(sq_ref)

    x = x_ref[...].astype(jnp.float32)
    # Mask lanes past the true plane length (last chunk may be partial).
    col = lax.broadcasted_iota(jnp.int32, x.shape, 1) + k * hw_chunk
    x = jnp.where(col < hw_total, x, 0.0)
    sum_ref[...] += jnp.sum(x, axis=-1, keepdims=True)
    sq_ref[...] += jnp.sum(x * x, axis=-1, keepdims=True)

    @pl.when(k == nk - 1)
    def _():
        denom = hw_total - 1 if hw_total > 1 else 1
        mean = sum_ref[...] * (1.0 / hw_total)
        var = jnp.maximum(sq_ref[...] - sum_ref[...] * mean, 0.0) * (1.0 / denom)
        inv_std = 1.0 / (jnp.sqrt(var) + 1e-5)
        gamma = gb_ref[:, 0:1].astype(jnp.float32)
        beta = gb_ref[:, 1:2].astype(jnp.float32)
        scale = gamma * inv_std
        shift = beta - mean * scale
        st_ref[...] = jnp.concatenate([scale, shift], axis=-1)


def _apply_kernel(x_ref, st_ref, o_ref):
    scale = st_ref[:, 0:1]
    shift = st_ref[:, 1:2]
    o_ref[...] = (x_ref[...].astype(jnp.float32) * scale + shift).astype(o_ref.dtype)


def _norm2d_chunked(x2, gb, rows, hw, elem_bytes, sub, max_block_bytes, vmem_limit):
    rb = rows if rows <= sub else sub
    # Largest lane chunk (multiple of 128) that keeps the block within budget.
    hwc = max(128, (max_block_bytes // (rb * elem_bytes)) // 128 * 128)
    hwc = min(hwc, pl.cdiv(hw, 128) * 128)
    nk = pl.cdiv(hw, hwc)
    grid = (pl.cdiv(rows, rb), nk)
    sem = ("parallel", "arbitrary")
    cparams = pltpu.CompilerParams(
        dimension_semantics=sem, vmem_limit_bytes=vmem_limit
    )

    # Pass 1: per-row (scale, shift) statistics.
    stats = pl.pallas_call(
        functools.partial(_stats_kernel, hw_total=hw, hw_chunk=hwc),
        out_shape=jax.ShapeDtypeStruct((rows, 2), jnp.float32),
        grid_spec=pltpu.PrefetchScalarGridSpec(
            num_scalar_prefetch=0,
            grid=grid,
            in_specs=[
                pl.BlockSpec((rb, hwc), lambda r, k: (r, k)),
                pl.BlockSpec((rb, 2), lambda r, k: (r, 0)),
            ],
            out_specs=pl.BlockSpec((rb, 2), lambda r, k: (r, 0)),
            scratch_shapes=[
                pltpu.VMEM((rb, 1), jnp.float32),
                pltpu.VMEM((rb, 1), jnp.float32),
            ],
        ),
        compiler_params=cparams,
    )(x2, gb)

    # Pass 2: elementwise normalize using the resident per-row stats block.
    out2 = pl.pallas_call(
        _apply_kernel,
        out_shape=jax.ShapeDtypeStruct((rows, hw), x2.dtype),
        grid_spec=pltpu.PrefetchScalarGridSpec(
            num_scalar_prefetch=0,
            grid=grid,
            in_specs=[
                pl.BlockSpec((rb, hwc), lambda r, k: (r, k)),
                pl.BlockSpec((rb, 2), lambda r, k: (r, 0)),
            ],
            out_specs=pl.BlockSpec((rb, hwc), lambda r, k: (r, k)),
        ),
        compiler_params=cparams,
    )(x2, stats)
    return out2


# --------------------------------------------------------------------------- #
# Wrapper
# --------------------------------------------------------------------------- #
def norm2d(x, gamma, beta, *, max_block_bytes=None, vmem_limit_bytes=None):
    """x: (N, C, H, W); gamma, beta: (1, C, 1, 1)."""
    N, C, H, W = x.shape
    rows, hw = N * C, H * W
    elem_bytes = jnp.dtype(x.dtype).itemsize
    sub = _sublane_multiple(x.dtype)

    auto_limit, auto_block = _vmem_budget()
    vmem_limit = auto_limit if vmem_limit_bytes is None else int(vmem_limit_bytes)
    block_budget = auto_block if max_block_bytes is None else int(max_block_bytes)

    # Lane-dense layout: rows = fused (n, c) planes, last dim = full H*W plane.
    x2 = x.reshape(rows, hw)
    g_rows = jnp.broadcast_to(gamma.reshape(1, C), (N, C)).reshape(rows)
    b_rows = jnp.broadcast_to(beta.reshape(1, C), (N, C)).reshape(rows)
    gb = jnp.stack([g_rows, b_rows], axis=-1)  # (rows, 2): one small DMA per block

    rb = _pick_block_rows(rows, hw, elem_bytes, block_budget, sub)

    if rb > 0:
        grid = (pl.cdiv(rows, rb),)
        out2 = pl.pallas_call(
            _norm2d_rows_kernel,
            out_shape=jax.ShapeDtypeStruct((rows, hw), x.dtype),
            grid_spec=pltpu.PrefetchScalarGridSpec(
                num_scalar_prefetch=0,
                grid=grid,
                in_specs=[
                    pl.BlockSpec((rb, hw), lambda i: (i, 0)),
                    pl.BlockSpec((rb, 2), lambda i: (i, 0)),
                ],
                out_specs=pl.BlockSpec((rb, hw), lambda i: (i, 0)),
            ),
            compiler_params=pltpu.CompilerParams(
                dimension_semantics=("parallel",),
                vmem_limit_bytes=vmem_limit,
            ),
        )(x2, gb)
    else:
        out2 = _norm2d_chunked(
            x2, gb, rows, hw, elem_bytes, sub, block_budget, vmem_limit
        )

    return out2.reshape(N, C, H, W)


# --------------------------------------------------------------------------- #
# Reference & test
# --------------------------------------------------------------------------- #
def _reference(x, gamma, beta):
    # Pure-JAX reference mirroring torch semantics (unbiased std).
    x32 = x.astype(jnp.float32)
    mean = jnp.mean(x32, axis=(-1, -2), keepdims=True)
    hw = x.shape[-1] * x.shape[-2]
    var = jnp.sum((x32 - mean) ** 2, axis=(-1, -2), keepdims=True) / (hw - 1)
    std = jnp.sqrt(var) + 1e-5
    return ((x32 - mean) / std * gamma + beta).astype(x.dtype)


if __name__ == "__main__":
    key = jax.random.PRNGKey(0)
    kx, kg, kb = jax.random.split(key, 3)

    # Module __init__: gamma = ones(1, C, 1, 1), beta = zeros(1, C, 1, 1).
    # Perturb deterministically so the affine path is actually exercised.
    N, C, H, W = 2, 4, 16, 16
    x = jax.random.normal(kx, (N, C, H, W), dtype=jnp.float32)
    gamma = jnp.ones((1, C, 1, 1), jnp.float32) + 0.1 * jax.random.normal(kg, (1, C, 1, 1))
    beta = jnp.zeros((1, C, 1, 1), jnp.float32) + 0.1 * jax.random.normal(kb, (1, C, 1, 1))

    out = jax.block_until_ready(norm2d(x, gamma, beta))
    ref = _reference(x, gamma, beta)
    assert out.shape == (N, C, H, W)
    assert jnp.allclose(out, ref, atol=1e-5, rtol=1e-5), "fast-path mismatch"

    # Also exercise the lane-chunked (large-plane) fallback path on small data
    # by shrinking the block budget.
    x_c = jax.random.normal(kx, (1, 2, 32, 64), dtype=jnp.float32)
    g_c = jnp.ones((1, 2, 1, 1), jnp.float32) + 0.1 * jax.random.normal(kg, (1, 2, 1, 1))
    b_c = 0.1 * jax.random.normal(kb, (1, 2, 1, 1))
    out_c = jax.block_until_ready(norm2d(x_c, g_c, b_c, max_block_bytes=1024))
    ref_c = _reference(x_c, g_c, b_c)
    assert jnp.allclose(out_c, ref_c, atol=1e-5, rtol=1e-5), "chunked-path mismatch"

    print("KERNEL_OK")
</pallas_src>

<mosaic_0001>
module attributes {stable_mosaic.version = 11 : i64} {
  func.func @_norm2d_rows_kernel(%arg0: i32, %arg1: memref<8x256xf32, #tpu.memory_space<vmem>>, %arg2: memref<8x2xf32, #tpu.memory_space<vmem>>, %arg3: memref<8x256xf32, #tpu.memory_space<vmem>>) attributes {dimension_semantics = [#tpu.dimension_semantics<parallel>], iteration_bounds = array<i64: 1>, scalar_prefetch = 0 : i64, scratch_operands = 0 : i64, tpu.core_type = #tpu.core_type<tc>, window_params = [{transform_indices = @transform_0, window_bounds = array<i64: 8, 256>}, {transform_indices = @transform_1, window_bounds = array<i64: 8, 2>}, {transform_indices = @transform_2, window_bounds = array<i64: 8, 256>}]} {
    %c0 = arith.constant 0 : index
    %c0_0 = arith.constant 0 : index
    %0 = vector.load %arg1[%c0, %c0_0] : memref<8x256xf32, #tpu.memory_space<vmem>>, vector<8x256xf32>
    %cst = arith.constant dense<0.000000e+00> : vector<8xf32>
    %1 = vector.multi_reduction <add>, %0, %cst [1] : vector<8x256xf32> to vector<8xf32>
    %2 = vector.shape_cast %1 : vector<8xf32> to vector<8x1xf32>
    %cst_1 = arith.constant 3.906250e-03 : f32
    %3 = vector.broadcast %cst_1 : f32 to vector<8x1xf32>
    %4 = arith.mulf %2, %3 : vector<8x1xf32>
    %5 = vector.broadcast %4 : vector<8x1xf32> to vector<8x256xf32>
    %6 = arith.subf %0, %5 : vector<8x256xf32>
    %7 = arith.mulf %6, %6 : vector<8x256xf32>
    %cst_2 = arith.constant dense<0.000000e+00> : vector<8xf32>
    %8 = vector.multi_reduction <add>, %7, %cst_2 [1] : vector<8x256xf32> to vector<8xf32>
    %9 = vector.shape_cast %8 : vector<8xf32> to vector<8x1xf32>
    %cst_3 = arith.constant 0.00392156886 : f32
    %10 = vector.broadcast %cst_3 : f32 to vector<8x1xf32>
    %11 = arith.mulf %9, %10 : vector<8x1xf32>
    %12 = math.sqrt %11 : vector<8x1xf32>
    %cst_4 = arith.constant 9.99999974E-6 : f32
    %13 = vector.broadcast %cst_4 : f32 to vector<8x1xf32>
    %14 = arith.addf %12, %13 : vector<8x1xf32>
    %cst_5 = arith.constant 1.000000e+00 : f32
    %15 = vector.broadcast %cst_5 : f32 to vector<8x1xf32>
    %16 = arith.divf %15, %14 : vector<8x1xf32>
    %c0_6 = arith.constant 0 : index
    %c0_7 = arith.constant 0 : index
    %17 = vector.load %arg2[%c0_6, %c0_7] : memref<8x2xf32, #tpu.memory_space<vmem>>, vector<8x1xf32>
    %c0_8 = arith.constant 0 : index
    %c1 = arith.constant 1 : index
    %18 = vector.load %arg2[%c0_8, %c1] : memref<8x2xf32, #tpu.memory_space<vmem>>, vector<8x1xf32>
    %19 = arith.mulf %17, %16 : vector<8x1xf32>
    %c0_9 = arith.constant 0 : index
    %c0_10 = arith.constant 0 : index
    %20 = vector.load %arg1[%c0_9, %c0_10] : memref<8x256xf32, #tpu.memory_space<vmem>>, vector<8x256xf32>
    %21 = vector.broadcast %4 : vector<8x1xf32> to vector<8x256xf32>
    %22 = arith.subf %20, %21 : vector<8x256xf32>
    %23 = vector.broadcast %19 : vector<8x1xf32> to vector<8x256xf32>
    %24 = arith.mulf %22, %23 : vector<8x256xf32>
    %25 = vector.broadcast %18 : vector<8x1xf32> to vector<8x256xf32>
    %26 = arith.addf %24, %25 : vector<8x256xf32>
    %c0_11 = arith.constant 0 : index
    %c0_12 = arith.constant 0 : index
    %27 = vector.load %arg3[%c0_11, %c0_12] : memref<8x256xf32, #tpu.memory_space<vmem>>, vector<8x256xf32>
    tpu.vector_store %arg3[%c0_11, %c0_12], %26 {strides = array<i32>} : memref<8x256xf32, #tpu.memory_space<vmem>>, vector<8x256xf32>,
    return
  }
  func.func @transform_0(%arg0: i32) -> (i32, i32) {
    %c0_i32 = arith.constant 0 : i32
    %c0_i32_0 = arith.constant 0 : i32
    return %arg0, %c0_i32 : i32, i32
  }
  func.func @transform_1(%arg0: i32) -> (i32, i32) {
    %c0_i32 = arith.constant 0 : i32
    %c0_i32_0 = arith.constant 0 : i32
    return %arg0, %c0_i32 : i32, i32
  }
  func.func @transform_2(%arg0: i32) -> (i32, i32) {
    %c0_i32 = arith.constant 0 : i32
    %c0_i32_0 = arith.constant 0 : i32
    return %arg0, %c0_i32 : i32, i32
  }
}

</mosaic_0001>

<bundles_post_ra>
// kernel: tpu_custom_call.1
= control target key start
LH: loop header
LB: loop body
LE: loop exit
PB: predicated region body
PF: predicated region fallthrough
CT: control target
= control target key end

     0   :  { %7 = vsyncpa [#allocation3], 0  ;;  %s186_s0 = inlined_call_operand.hbm [shape: f32[8,256], index: 0, kind: input, shape index: {}]   ;;  %s187_s1 = inlined_call_operand.vmem [shape: f32[8,2], index: 1, kind: input, shape index: {}]   ;;  %s188_s2 = inlined_call_operand.hbm [shape: f32[8,256], index: 2, kind: output, shape index: {}]  }
   0x1   :  { %8 = vsyncpa [#allocation4], 0  ;;  %s140_s9 = smov [#allocation2]   ;;  %s92_s13 = scalar_lea.hbm %s186_s0, 256 }
   0x2   :  { %s15_s10 = sshll.u32 %s140_s9, 4  ;;  %p93_p0 = scmp.ne.s32.totalorder %s186_s0, %s92_s13  ;;  %s16_s10 = int_to_ptr.vmem [resolvable:$true] %s15_s10 }
   0x3   :  { %p96_p1 = scmp.lt.u32.totalorder %s92_s13, %s186_s0 }
   0x5   :  { %p98_p2 = pnand %p96_p1, %p93_p0 }
   0x7   :  { %101 = shalt.err (!%p98_p2)
}
   0x8   :  { %s102_s18 = scalar_lea.vmem %s16_s10, 256  ;;  %p107_p4 = scmp.lt.s32.totalorder %s16_s10, %s16_s10 }
   0x9   :  { %p103_p3 = scmp.ne.s32.totalorder %s16_s10, %s102_s18  ;;  %p108_p5 = scmp.lt.s32.totalorder %s102_s18, %s102_s18 }
   0xb   :  { %p109_p6 = por %p108_p5, %p107_p4 }
   0xd   :  { %p110_p7 = pnand %p109_p6, %p103_p3 }
   0xf   :  { %113 = shalt.err (!%p110_p7)
}
  0x10   :  { %18 = dma.hbm_to_vmem [thread:$0]  %s186_s0, 256, %s16_s10, [#allocation3]  }
  0x11   :  { %136 = dma.done.wait [#allocation3], 256  }
  0x12   :  { %137 = vsyncadd [#allocation3], 4294967040  ;;  %v24_v0 = vld [vmem:[#allocation2] sm:$0xff]  ;;  %v25_v1 = vld [vmem:[#allocation2 + $0x8] sm:$0xff]  ;;  %v141_v10 = vmov 0   ;;  %v142_v11 = vmov 1  }
  0x13   :  { %v26_v2 = vadd.f32 %v25_v1, %v24_v0  ;;  %85 = vset.pattern.permute.xlu1 %v141_v10  ;;  %87 = vset.pattern.permute.xlu0 %v142_v11  ;;  %v48_v20 = vld [vmem:[%s187_s1] sm:$0xff]  ;;  %s143_s22 = smov [#allocation5]  }
  0x14   :  { %s72_s23 = sshll.u32 %s143_s22, 4  ;;  %s73_s23 = int_to_ptr.vmem [resolvable:$true] %s72_s23 }
  0x15   :  { %27 = vadd.xlane.f32.xlu0 %v26_v2  ;;  %s114_s24 = scalar_lea.vmem %s73_s23, 256  ;;  %p119_p9 = scmp.lt.s32.totalorder %s73_s23, %s73_s23 }
  0x16   :  { %p115_p8 = scmp.ne.s32.totalorder %s73_s23, %s114_s24  ;;  %p120_p10 = scmp.lt.s32.totalorder %s114_s24, %s114_s24 }
  0x18   :  { %p121_p11 = por %p120_p10, %p119_p9 }
  0x1a   :  { %p122_p12 = pnand %p121_p11, %p115_p8 }
  0xa2   :  { %v28_v3 = vpop.xlane.xlu0 %27 }
  0xa3   :  { %v29_v4 = vmul.f32 0.00390625, %v28_v3 }
  0xa5   :  { %v30_v5 = vsub.f32 %v24_v0, %v29_v4  ;;  %v31_v6 = vsub.f32 %v25_v1, %v29_v4 }
  0xa7   :  { %v32_v7 = vmul.f32 %v30_v5, %v30_v5  ;;  %v33_v8 = vmul.f32 %v31_v6, %v31_v6 }
  0xa9   :  { %v34_v9 = vadd.f32 %v33_v8, %v32_v7 }
  0xab   :  { %35 = vadd.xlane.f32.xlu0 %v34_v9 }
 0x138   :  { %v36_v12 = vpop.xlane.xlu0 %35 }
 0x139   :  { %v37_v13 = vmul.f32 0.003921569, %v36_v12 }
 0x13b   :  { %88 = vrsqrt.f32 %v37_v13  ;;  %vm40_vm0 = vcmp.eq.f32.partialorder %v37_v13, inf  ;;  %v43_v16 = vand.u32 2147483648, %v37_v13  ;;  %vm42_vm1 = vcmp.eq.f32.partialorder %v37_v13, 0.0 }
 0x145   :  { %v89_v14 = vpop.eup %88 }
 0x146   :  { %v39_v15 = vmul.f32 %v89_v14, %v37_v13 }
 0x148   :  { %v41_v17 = vsel %vm40_vm0, %v37_v13, %v39_v15 }
 0x149   :  { %v44_v18 = vsel %vm42_vm1, %v43_v16, %v41_v17 }
 0x14a   :  { %v45_v19 = vadd.f32 1e-05, %v44_v18 }
 0x14c   :  { %90 = vrcp.f32 %v45_v19 }
 0x156   :  { %v91_v21 = vpop.eup %90 }
 0x157   :  { %v49_v22 = vmul.f32 %v91_v21, %v48_v20 }
 0x159   :  { %52 = vperm.xlu1 %85, %v49_v22  }
 0x15d   :  { %86 = vset.pattern.permute.xlu1 %v142_v11 }
 0x15e   :  { %59 = vperm.xlu1 %86, %v48_v20  }
 0x1d8   :  { %v53_v23 = vpop.permute.xlu1 %52 }
 0x1d9   :  { %v55_v24 = vmul.f32 %v53_v23, %v30_v5  ;;  %v56_v25 = vmul.f32 %v53_v23, %v31_v6 }
 0x1dd   :  { %v60_v26 = vpop.permute.xlu1 %59 }
 0x1de   :  { %v62_v27 = vadd.f32 %v60_v26, %v55_v24  ;;  %v63_v28 = vadd.f32 %v60_v26, %v56_v25 }
 0x1e0   :  { %64 = vst [vmem:[#allocation5] sm:$0xff] %v62_v27  ;;  %65 = vst [vmem:[#allocation5 + $0x8] sm:$0xff] %v63_v28 }
 0x1e1   :  { %125 = shalt.err (!%p122_p12)
}
 0x1e2   :  { %s126_s26 = scalar_lea.hbm %s188_s2, 256 }
 0x1e3   :  { %p127_p13 = scmp.ne.s32.totalorder %s188_s2, %s126_s26  ;;  %p130_p0 = scmp.lt.u32.totalorder %s126_s26, %s188_s2 }
 0x1e5   :  { %p132_p1 = pnand %p130_p0, %p127_p13 }
 0x1e7   :  { %135 = shalt.err (!%p132_p1)
}
 0x1e8   :  { %75 = dma.vmem_to_hbm [thread:$0]  %s73_s23, 256, %s188_s2, [#allocation4]  }
 0x1e9   :  { %138 = dma.done.wait [#allocation4], 256  }
 0x1ea   :  { %139 = vsyncadd [#allocation4], 4294967040 }
 0x1eb   :  { %79 = vsyncpa [#allocation3], 1 }
 0x1ec   :  { %80 = vsyncpa [#allocation4], 1 }

</bundles_post_ra>
